<compile_context>
chip_gen: v7x
topology: tpu7x:2x2x1
jax: 0.10.0
libtpu: 0.0.40
codegen_flags: <defaults>
</compile_context>

<pallas_src>
import numpy as np
import jax
import jax.numpy as jnp
from jax.experimental import pallas as pl
from jax.experimental.pallas import tpu as pltpu

INPUT_SIZE = 6      # Acrobot-v1 observation_space.shape[0]
HIDDEN1 = 8
HIDDEN2 = 4
OUTPUT_SIZE = 3
FEAT_PAD = 8        # all feature dims padded to one sublane group
LANE = 128          # batch-tile granularity (lane width)


def _round_up(n, m):
    return ((n + m - 1) // m) * m


def _mlp_kernel(xt_ref, w1_ref, w2_ref, w3_ref, o_ref):
    # Batch-on-lanes tiles: xt is (8, TB); weights are (8, 8), VMEM-resident
    # per individual.  All three matmuls are (8,8)@(8,TB) -> lane-dense.
    x_t = xt_ref[...]
    h1 = jnp.tanh(jnp.dot(w1_ref[...], x_t,
                          preferred_element_type=jnp.float32))
    h2 = jnp.tanh(jnp.dot(w2_ref[...], h1,
                          preferred_element_type=jnp.float32))
    # Padded weight rows are zero -> padded output rows are tanh(0)=0 and are
    # sliced off (or simply ignored) by the wrapper.
    o_ref[...] = jnp.tanh(jnp.dot(w3_ref[...], h2,
                                  preferred_element_type=jnp.float32))


def prepare_population_weights(W1s, W2s, W3s):
    """Once-per-population weight preprocessing (layout plumbing only).

    W1s:(P,h1,in), W2s:(P,h2,h1), W3s:(P,out,h2) in PyTorch layout ->
    zero-padded (P, 8, 8) operands for the transposed (features, batch) kernel.
    """
    W1s = jnp.asarray(W1s, jnp.float32)
    W2s = jnp.asarray(W2s, jnp.float32)
    W3s = jnp.asarray(W3s, jnp.float32)
    w1p = jnp.pad(W1s, ((0, 0), (0, FEAT_PAD - HIDDEN1), (0, FEAT_PAD - INPUT_SIZE)))
    w2p = jnp.pad(W2s, ((0, 0), (0, FEAT_PAD - HIDDEN2), (0, FEAT_PAD - HIDDEN1)))
    w3p = jnp.pad(W3s, ((0, 0), (0, FEAT_PAD - OUTPUT_SIZE), (0, FEAT_PAD - HIDDEN2)))
    return w1p, w2p, w3p


def _choose_batch_tile(B, P, max_block_cols):
    TB = max(LANE, min(max_block_cols, _round_up(B, LANE)))
    # v7x has 2 TensorCores: make sure there are >=2 parallel grid steps when
    # the batch is big enough and the population axis doesn't already provide
    # them (harmless no-op on single-TC v5e/v6e).
    if P == 1 and pl.cdiv(B, TB) == 1 and B > LANE:
        TB = _round_up(pl.cdiv(B, 2), LANE)
    return TB


def neural_net_forward_population(x, w1p, w2p, w3p, *, max_block_cols=2048):
    """x: (B, INPUT_SIZE) f32, shared across the population.
    w*p: (P, 8, 8) from prepare_population_weights().
    Returns (P, B, OUTPUT_SIZE)."""
    B = x.shape[0]
    P = w1p.shape[0]
    TB = _choose_batch_tile(B, P, max_block_cols)
    num_blocks = pl.cdiv(B, TB)
    B_pad = num_blocks * TB

    # Transpose to batch-on-lanes and pad features->8, batch->B_pad with
    # zeros (tanh(0)=0 in padded positions; sliced off below).
    x_t = jnp.zeros((FEAT_PAD, B_pad), jnp.float32)
    x_t = x_t.at[:INPUT_SIZE, :B].set(jnp.asarray(x, jnp.float32).T)

    out = pl.pallas_call(
        _mlp_kernel,
        out_shape=jax.ShapeDtypeStruct((P, FEAT_PAD, B_pad), jnp.float32),
        grid=(P, num_blocks),
        in_specs=[
            # Shared input tile: depends only on the batch-block index.
            pl.BlockSpec((FEAT_PAD, TB), lambda p, i: (0, i)),
            # Per-individual weights: population dim squeezed out in-kernel.
            pl.BlockSpec((None, FEAT_PAD, FEAT_PAD), lambda p, i: (p, 0, 0)),
            pl.BlockSpec((None, FEAT_PAD, FEAT_PAD), lambda p, i: (p, 0, 0)),
            pl.BlockSpec((None, FEAT_PAD, FEAT_PAD), lambda p, i: (p, 0, 0)),
        ],
        # Lane-dense (8, TB) output tile per (individual, batch-block).
        out_specs=pl.BlockSpec((None, FEAT_PAD, TB), lambda p, i: (p, 0, i)),
        compiler_params=pltpu.CompilerParams(
            dimension_semantics=("parallel", "parallel")),
    )(x_t, w1p, w2p, w3p)

    # Rows 0..2 are the real logits (batch on the lane axis).  Downstream code
    # that only needs argmax-over-3-actions can consume `out` directly and
    # skip this slice/transpose entirely.
    return jnp.transpose(out[:, :OUTPUT_SIZE, :B], (0, 2, 1))


def neural_net_forward(x, w1p, w2p, w3p, *, max_block_cols=2048):
    """Single-individual convenience wrapper (w*p must have P == 1)."""
    return neural_net_forward_population(
        x, w1p, w2p, w3p, max_block_cols=max_block_cols)[0]


def build_weights_from_individual(individual):
    """Mirror NeuralNet._set_weight_matrizes (direct encoding; biases present
    in the genome but unused since Linear(..., bias=False))."""
    w1_size = INPUT_SIZE * HIDDEN1
    w2_size = HIDDEN1 * HIDDEN2
    w3_size = HIDDEN2 * OUTPUT_SIZE
    ind = np.asarray(individual, dtype=np.float32)
    W1 = ind[0:w1_size].reshape(HIDDEN1, INPUT_SIZE)
    W2 = ind[w1_size:w1_size + w2_size].reshape(HIDDEN2, HIDDEN1)
    W3 = ind[w1_size + w2_size:w1_size + w2_size + w3_size].reshape(
        OUTPUT_SIZE, HIDDEN2)
    return jnp.asarray(W1), jnp.asarray(W2), jnp.asarray(W3)


def _reference(x, W1, W2, W3):
    return jnp.tanh(jnp.tanh(jnp.tanh(x @ W1.T) @ W2.T) @ W3.T)


if __name__ == "__main__":
    key = jax.random.PRNGKey(0)
    k_pop, kx1, kx2 = jax.random.split(key, 3)

    # Deterministic synthetic population (genomes): weights + unused biases.
    P = 4
    n_weights = INPUT_SIZE * HIDDEN1 + HIDDEN1 * HIDDEN2 + HIDDEN2 * OUTPUT_SIZE
    n_biases = HIDDEN1 + HIDDEN2 + OUTPUT_SIZE
    population = np.asarray(
        jax.random.uniform(k_pop, (P, n_weights + n_biases),
                           minval=-1.0, maxval=1.0, dtype=jnp.float32))

    W1_list, W2_list, W3_list = [], [], []
    for ind in population:
        W1, W2, W3 = build_weights_from_individual(ind)
        W1_list.append(W1)
        W2_list.append(W2)
        W3_list.append(W3)
    W1s = jnp.stack(W1_list)   # (P, 8, 6)
    W2s = jnp.stack(W2_list)   # (P, 4, 8)
    W3s = jnp.stack(W3_list)   # (P, 3, 4)

    # Hoisted, once-per-population weight preprocessing.
    w1p, w2p, w3p = prepare_population_weights(W1s, W2s, W3s)

    # --- population forward at tiny batch (per-env-step usage, one call) ---
    batch = 2
    x = jax.random.normal(kx1, (batch, INPUT_SIZE), dtype=jnp.float32)
    out = jax.block_until_ready(neural_net_forward_population(x, w1p, w2p, w3p))
    assert out.shape == (P, batch, OUTPUT_SIZE)
    for p in range(P):
        ref = _reference(x, W1s[p], W2s[p], W3s[p])
        np.testing.assert_allclose(np.asarray(out[p]), np.asarray(ref),
                                   rtol=1e-5, atol=1e-5)

    # --- single individual, larger batch: exercises the batch grid, row/col
    #     zero-padding, and the v7x >=2-block split path ---
    batch2 = 300
    x2 = jax.random.normal(kx2, (batch2, INPUT_SIZE), dtype=jnp.float32)
    out2 = jax.block_until_ready(
        neural_net_forward(x2, w1p[:1], w2p[:1], w3p[:1]))
    ref2 = _reference(x2, W1s[0], W2s[0], W3s[0])
    np.testing.assert_allclose(np.asarray(out2), np.asarray(ref2),
                               rtol=1e-5, atol=1e-5)

    print("KERNEL_OK")
</pallas_src>

<mosaic_0001>
module attributes {stable_mosaic.version = 11 : i64} {
  func.func @_mlp_kernel(%arg0: i32, %arg1: i32, %arg2: memref<8x128xf32, #tpu.memory_space<vmem>>, %arg3: memref<1x8x8xf32, #tpu.memory_space<vmem>>, %arg4: memref<1x8x8xf32, #tpu.memory_space<vmem>>, %arg5: memref<1x8x8xf32, #tpu.memory_space<vmem>>, %arg6: memref<1x8x128xf32, #tpu.memory_space<vmem>>) attributes {dimension_semantics = [#tpu.dimension_semantics<parallel>, #tpu.dimension_semantics<parallel>], iteration_bounds = array<i64: 4, 1>, scalar_prefetch = 0 : i64, scratch_operands = 0 : i64, tpu.core_type = #tpu.core_type<tc>, window_params = [{transform_indices = @transform_0, window_bounds = array<i64: 8, 128>}, {transform_indices = @transform_1, window_bounds = array<i64: 1, 8, 8>}, {transform_indices = @transform_2, window_bounds = array<i64: 1, 8, 8>}, {transform_indices = @transform_3, window_bounds = array<i64: 1, 8, 8>}, {transform_indices = @transform_4, window_bounds = array<i64: 1, 8, 128>}]} {
    %c0 = arith.constant 0 : index
    %c0_0 = arith.constant 0 : index
    %0 = vector.load %arg2[%c0, %c0_0] : memref<8x128xf32, #tpu.memory_space<vmem>>, vector<8x128xf32>
    %c0_1 = arith.constant 0 : index
    %c0_2 = arith.constant 0 : index
    %c0_3 = arith.constant 0 : index
    %1 = vector.load %arg3[%c0_1, %c0_2, %c0_3] : memref<1x8x8xf32, #tpu.memory_space<vmem>>, vector<1x8x8xf32>
    %2 = vector.shape_cast %1 : vector<1x8x8xf32> to vector<8x8xf32>
    %cst = arith.constant dense<0.000000e+00> : vector<8x128xf32>
    %3 = tpu.matmul %2, %0, %cst {dimension_numbers = #tpu.dot_dimension_numbers<[1], [0], [0], [1], [0, 0, 1, 1], [], []>} : vector<8x8xf32>, vector<8x128xf32>, vector<8x128xf32> -> vector<8x128xf32>
    %4 = math.tanh %3 : vector<8x128xf32>
    %c0_4 = arith.constant 0 : index
    %c0_5 = arith.constant 0 : index
    %c0_6 = arith.constant 0 : index
    %5 = vector.load %arg4[%c0_4, %c0_5, %c0_6] : memref<1x8x8xf32, #tpu.memory_space<vmem>>, vector<1x8x8xf32>
    %6 = vector.shape_cast %5 : vector<1x8x8xf32> to vector<8x8xf32>
    %cst_7 = arith.constant dense<0.000000e+00> : vector<8x128xf32>
    %7 = tpu.matmul %6, %4, %cst_7 {dimension_numbers = #tpu.dot_dimension_numbers<[1], [0], [0], [1], [0, 0, 1, 1], [], []>} : vector<8x8xf32>, vector<8x128xf32>, vector<8x128xf32> -> vector<8x128xf32>
    %8 = math.tanh %7 : vector<8x128xf32>
    %c0_8 = arith.constant 0 : index
    %c0_9 = arith.constant 0 : index
    %c0_10 = arith.constant 0 : index
    %9 = vector.load %arg5[%c0_8, %c0_9, %c0_10] : memref<1x8x8xf32, #tpu.memory_space<vmem>>, vector<1x8x8xf32>
    %10 = vector.shape_cast %9 : vector<1x8x8xf32> to vector<8x8xf32>
    %cst_11 = arith.constant dense<0.000000e+00> : vector<8x128xf32>
    %11 = tpu.matmul %10, %8, %cst_11 {dimension_numbers = #tpu.dot_dimension_numbers<[1], [0], [0], [1], [0, 0, 1, 1], [], []>} : vector<8x8xf32>, vector<8x128xf32>, vector<8x128xf32> -> vector<8x128xf32>
    %12 = math.tanh %11 : vector<8x128xf32>
    %c0_12 = arith.constant 0 : index
    %c0_13 = arith.constant 0 : index
    %c0_14 = arith.constant 0 : index
    %13 = vector.load %arg6[%c0_12, %c0_13, %c0_14] : memref<1x8x128xf32, #tpu.memory_space<vmem>>, vector<1x8x128xf32>
    %14 = vector.shape_cast %13 : vector<1x8x128xf32> to vector<8x128xf32>
    %15 = vector.shape_cast %12 : vector<8x128xf32> to vector<1x8x128xf32>
    tpu.vector_store %arg6[%c0_12, %c0_13, %c0_14], %15 {strides = array<i32>} : memref<1x8x128xf32, #tpu.memory_space<vmem>>, vector<1x8x128xf32>,
    return
  }
  func.func @transform_0(%arg0: i32, %arg1: i32) -> (i32, i32) {
    %c0_i32 = arith.constant 0 : i32
    %c0_i32_0 = arith.constant 0 : i32
    return %c0_i32, %arg1 : i32, i32
  }
  func.func @transform_1(%arg0: i32, %arg1: i32) -> (i32, i32, i32) {
    %c0_i32 = arith.constant 0 : i32
    %c0_i32_0 = arith.constant 0 : i32
    %c0_i32_1 = arith.constant 0 : i32
    return %arg0, %c0_i32, %c0_i32_0 : i32, i32, i32
  }
  func.func @transform_2(%arg0: i32, %arg1: i32) -> (i32, i32, i32) {
    %c0_i32 = arith.constant 0 : i32
    %c0_i32_0 = arith.constant 0 : i32
    %c0_i32_1 = arith.constant 0 : i32
    return %arg0, %c0_i32, %c0_i32_0 : i32, i32, i32
  }
  func.func @transform_3(%arg0: i32, %arg1: i32) -> (i32, i32, i32) {
    %c0_i32 = arith.constant 0 : i32
    %c0_i32_0 = arith.constant 0 : i32
    %c0_i32_1 = arith.constant 0 : i32
    return %arg0, %c0_i32, %c0_i32_0 : i32, i32, i32
  }
  func.func @transform_4(%arg0: i32, %arg1: i32) -> (i32, i32, i32) {
    %c0_i32 = arith.constant 0 : i32
    %c0_i32_0 = arith.constant 0 : i32
    return %arg0, %c0_i32, %arg1 : i32, i32, i32
  }
}

</mosaic_0001>

<bundles_post_ra>
// kernel: tpu_custom_call.1
= control target key start
LH: loop header
LB: loop body
LE: loop exit
PB: predicated region body
PF: predicated region fallthrough
CT: control target
= control target key end

     0   :  { %s1367_s0 = inlined_call_operand.hbm [shape: f32[8,128], index: 0, kind: input, shape index: {}]   ;;  %s1368_s1 = inlined_call_operand.hbm [shape: f32[4,8,8], index: 1, kind: input, shape index: {}]   ;;  %s1369_s2 = inlined_call_operand.hbm [shape: f32[4,8,8], index: 2, kind: input, shape index: {}]   ;;  %s1370_s3 = inlined_call_operand.hbm [shape: f32[4,8,8], index: 3, kind: input, shape index: {}]   ;;  %s1371_s4 = inlined_call_operand.hbm [shape: f32[4,8,128], index: 4, kind: output, shape index: {}]  }
   0x1   :  { %1386 = sst [smem:[#allocation19_spill]] %s1368_s1 }
   0x2   :  { %9 = vsyncpa [#allocation3], 0 }
   0x3   :  { %10 = vsyncpa [#allocation6], 0 }
   0x4   :  { %12 = vsyncpa [#allocation6 + $0x1], 0 }
   0x5   :  { %13 = vsyncpa [#allocation9], 0 }
   0x6   :  { %15 = vsyncpa [#allocation9 + $0x1], 0 }
   0x7   :  { %16 = vsyncpa [#allocation4], 0 }
   0x8   :  { %18 = vsyncpa [#allocation4 + $0x1], 0  ;;  %s1075_s15 = smov 0   ;;  %s1077_s16 = smov 0  }
   0x9   :  { %s1079_s17 = smov 0   ;;  %s1081_s18 = smov 0  }
   0xa   :  { %s1083_s19 = smov 0   ;;  %s1085_s20 = smov 0  }
   0xb LB: > { %1387 = sst [smem:[#allocation15_spill]] %s1037_s19  ;;  %s36_s21 = sadd.s32 1, %s1037_s19  ;;  %s1041_s20 = sphi %s1085_s20, %s24_s20   ;;  %s1037_s19 = sphi %s1083_s19, %s1414_s19   ;;  %s1033_s18 = sphi %s1081_s18, %s1413_s18   ;;  %s1029_s17 = sphi %s1079_s17, %s1417_s17   ;;  %s1025_s16 = sphi %s1077_s16, %s1416_s16   ;;  %s1021_s15 = sphi %s1075_s15, %s1415_s15  }
   0xc   : > { %s69_s22 = sadd.s32 1, %s1029_s17  ;;  %p38_p0 = scmp.ge.s32.totalorder %s36_s21, 4 }
   0xd   : > { %p1372_p1 = scmp.ne.s32.totalorder %s1029_s17, %s1025_s16  ;;  %p77_p2 = scmp.eq.s32.totalorder %s1041_s20, 0 }
   0xe   : > { %s1419_s21 = smov (%p38_p0, %s36_s21), 0  ;;  %p773_p4 = scmp.lt.s32.totalorder %s1041_s20, 4 }
   0xf   : > { %1388 = sst [smem:[#allocation16_spill]] %s1419_s21  ;;  %p78_p3 = por %p77_p2, %p1372_p1 }
  0x10   : > { %s66_s23 = ssub.s32 %s1037_s19, %s1419_s21  ;;  %s199_s24 = sand.u32 1, %s1041_s20  }
  0x11   : > { %p67_p5 = scmp.eq.s32.totalorder %s66_s23, 0  ;;  %s1373_s25 = sand.u32 1, %s1029_s17  }
  0x12   : > { %s1121_s26 = sshll.u32 %s1037_s19, 7  ;;  %s1128_s28 = sshll.u32 %s1373_s25, 3 }
  0x13   : > { %s1124_s27 = scalar_select %p67_p5, %s1029_s17, %s69_s22  }
  0x14   : > { %s1390_s1 = sld [smem:[#allocation19_spill]]  ;;  %p1136_p6 = pnand %p773_p4, %p78_p3 }
  0x15   : > { %1389 = sst [smem:[#allocation17_spill]] %s1124_s27  ;;  %s203_s7 = scalar_lea.vmem [#allocation5], %s1128_s28 }
  0x16   : > { %s1391_s6 = scalar_select %p1136_p6, 1, 0 }
  0x17   : > { %s210_s8 = sshll.u32 %s203_s7, 4  ;;  %s1143_s9 = scalar_lea.sflag [#allocation6], %s199_s24  ;;  %s1141_s8 = int_to_ptr.vmem [resolvable:$true] %s210_s8 }
  0x18   : > { %p1149_p8 = pneg %p1136_p6 }
  0x1a   : > { %s1134_s5 = scalar_lea.hbm %s1390_s1, %s1121_s26  ;;  %s838_s14 = scalar_lea.hbm %s1390_s1, 512 }
  0x1b   : > { %s833_s10 = scalar_lea.hbm %s1134_s5, 128  ;;  %p839_p11 = scmp.lt.u32.totalorder %s1134_s5, %s1390_s1 }
  0x1c   : > { %p834_p7 = scmp.ne.s32.totalorder %s1134_s5, %s833_s10  ;;  %p840_p12 = scmp.lt.u32.totalorder %s838_s14, %s833_s10 }
  0x1d   : > { %s1392_s11 = scalar_select %p1149_p8, 1, 0 }
  0x1e   : > { %p836_p9 = pnand %p1149_p8, %p834_p7  ;;  %p841_p13 = por %p840_p12, %p839_p11 }
  0x1f   : > { %p842_p0 = scmp.lt.u32.totalorder %s833_s10, %s1134_s5 }
  0x20   : > { %p837_p10 = pneg %p836_p9 }
  0x21   : > { %p843_p2 = por %p842_p0, %p841_p13 }
  0x23   : > { %p844_p3 = pnand %p843_p2, %p837_p10 }
  0x25   : > { %847 = shalt.err (!%p844_p3)
}
  0x26   : > { %s848_s24 = scalar_lea.vmem %s1141_s8, 128  ;;  %s1043_s29 = smov [#allocation5]  }
  0x27   : > { %p849_p4 = scmp.ne.s32.totalorder %s1141_s8, %s848_s24  ;;  %s853_s30 = sshll.u32 %s1043_s29, 4  ;;  %s854_s30 = int_to_ptr.vmem [resolvable:$false] %s853_s30 }
  0x28   : > { %s855_s7 = scalar_lea.vmem %s854_s30, 256  ;;  %p856_p9 = scmp.lt.s32.totalorder %s1141_s8, %s854_s30 }
  0x29   : > { %p851_p5 = pnand %p849_p4, %p1149_p8  ;;  %p857_p1 = scmp.lt.s32.totalorder %s855_s7, %s848_s24 }
  0x2b   : > { %p852_p7 = pneg %p851_p5  ;;  %p858_p11 = por %p857_p1, %p856_p9 }
  0x2d   : > { %p859_p12 = pnand %p858_p11, %p852_p7 }
  0x2f   : > { %862 = shalt.err (!%p859_p12)
}
  0x30   : > { %761 = dma.hbm_to_vmem [thread:$0]  (!%p1136_p6), %s1134_s5, 128, %s1141_s8, %s1143_s9  }
  0x31   : > { %s1174_s10 = sadd.s32 4294967295, %s1041_s20   ;;  %s698_s12 = sadd.s32 4294967294, %s1041_s20  }
  0x32   : > { %p82_p1 = scmp.ne.s32.totalorder %s1025_s16, %s1021_s15  ;;  %p1376_p10 = scmp.eq.s32.totalorder %s1174_s10, 0 }
  0x33   : > { %p160_p13 = scmp.eq.s32.totalorder %s1174_s10, 3  ;;  %p166_p0 = scmp.eq.s32.totalorder %s698_s12, 3 }
  0x34   : > { %p699_p2 = scmp.ge.s32.totalorder %s1041_s20, 1  ;;  %p1184_p3 = por %p1376_p10, %p82_p1 }
  0x35   : > { %p1394_p4 = scmp.ne.s32.totalorder %s1029_s17, %s1025_s16  ;;  %p1195_p7 = por %p166_p0, %p82_p1 }
  0x36   : > { %s1393_s13 = scalar_select %p1184_p3, 1, 0 }
  0x37   : > { %p1191_p5 = por %p160_p13, %p1394_p4  ;;  %p173_p9 = scmp.lt.s32.totalorder %s1041_s20, 5 }
  0x38   : > { %s1396_s8 = scalar_select %p1195_p7, 1, 0 }
  0x39   : > { %s1395_s5 = scalar_select %p1191_p5, 1, 0 }
  0x3a   : > { %1397 = sst [smem:[#allocation18_spill]] %s1396_s8  ;;  %p1200_p11 = pnand %p699_p2, %p173_p9 }
  0x3b   : > { %s1044_s22 = smov [#allocation2]   ;;  %s1212_s30 = scalar_lea.hbm %s1369_s2, %s1121_s26 }
  0x3c   : > { %s1398_s14 = scalar_select %p1200_p11, 1, 0 }
  0x3d   : > { %s188_s23 = sshll.u32 %s1044_s22, 4  ;;  %p754_p12 = pneg %p1200_p11  ;;  %s1204_s23 = int_to_ptr.vmem [resolvable:$true] %s188_s23 }
  0x3e   : > { %s221_s7 = scalar_lea.vmem [#allocation7], %s1128_s28  ;;  %s863_s22 = scalar_lea.hbm %s1212_s30, 128 }
  0x3f   : > { %s228_s12 = sshll.u32 %s221_s7, 4  ;;  %p1217_p1 = pnand %p754_p12, %p1376_p10  ;;  %s229_s12 = int_to_ptr.vmem [resolvable:$true] %s228_s12 }
  0x40   : > { %p864_p13 = scmp.ne.s32.totalorder %s1212_s30, %s863_s22  ;;  %s868_s1 = scalar_lea.hbm %s1369_s2, 512 }
  0x41   : > { %s1399_s25 = scalar_select %p1217_p1, 1, 0 }
  0x42   : > { %p866_p0 = pnand %p864_p13, %p1149_p8  ;;  %p869_p4 = scmp.lt.u32.totalorder %s1212_s30, %s1369_s2 }
  0x43   : > { %p870_p9 = scmp.lt.u32.totalorder %s868_s1, %s863_s22  ;;  %p872_p12 = scmp.lt.u32.totalorder %s863_s22, %s1212_s30 }
  0x44   : > { %p867_p2 = pneg %p866_p0 }
  0x45   : > { %p871_p7 = por %p870_p9, %p869_p4 }
  0x47   : > { %p873_p10 = por %p872_p12, %p871_p7 }
  0x49   : > { %p874_p5 = pnand %p873_p10, %p867_p2 }
  0x4b   : > { %877 = shalt.err (!%p874_p5)
}
  0x4c   : > { %s878_s7 = scalar_lea.vmem %s229_s12, 128  ;;  %s1045_s27 = smov [#allocation7]  }
  0x4d   : > { %p879_p3 = scmp.ne.s32.totalorder %s229_s12, %s878_s7  ;;  %s883_s8 = sshll.u32 %s1045_s27, 4  ;;  %s884_s8 = int_to_ptr.vmem [resolvable:$false] %s883_s8 }
  0x4e   : > { %s885_s24 = scalar_lea.vmem %s884_s8, 256  ;;  %p886_p11 = scmp.lt.s32.totalorder %s229_s12, %s884_s8 }
  0x4f   : > { %p881_p13 = pnand %p879_p3, %p1149_p8  ;;  %p887_p1 = scmp.lt.s32.totalorder %s885_s24, %s878_s7 }
  0x51   : > { %p882_p0 = pneg %p881_p13  ;;  %p888_p6 = por %p887_p1, %p886_p11 }
  0x53   : > { %p889_p4 = pnand %p888_p6, %p882_p0 }
  0x55   : > { %892 = shalt.err (!%p889_p4)
}
  0x56   : > { %p1400_p9 = scmp.ne.s32.totalorder %s1391_s6, 0  ;;  %s893_s21 = scalar_lea.hbm %s1367_s0, 128 }
  0x57   : > { %p894_p10 = scmp.ne.s32.totalorder %s1367_s0, %s893_s21  ;;  %p1401_p3 = scmp.ne.s32.totalorder %s1399_s25, 0 }
  0x58   : > { %764 = dma.hbm_to_vmem [thread:$0]  (!%p1400_p9), %s1212_s30, 128, %s229_s12, %s1143_s9  }
  0x59   : > { %p895_p5 = pneg %p1401_p3  ;;  %p900_p6 = scmp.lt.u32.totalorder %s893_s21, %s1367_s0 }
  0x5b   : > { %p896_p7 = pnand %p895_p5, %p894_p10 }
  0x5d   : > { %p897_p11 = pneg %p896_p7 }
  0x5f   : > { %p902_p1 = pnand %p900_p6, %p897_p11 }
  0x61   : > { %905 = shalt.err (!%p902_p1)
}
  0x62   : > { %s906_s9 = scalar_lea.vmem %s1204_s23, 128  ;;  %p914_p0 = scmp.lt.s32.totalorder %s1204_s23, %s1204_s23 }
  0x63   : > { %p907_p2 = scmp.ne.s32.totalorder %s1204_s23, %s906_s9  ;;  %p915_p4 = scmp.lt.s32.totalorder %s906_s9, %s906_s9 }
  0x65   : > { %p909_p12 = pnand %p907_p2, %p895_p5  ;;  %p916_p9 = por %p915_p4, %p914_p0 }
  0x67   : > { %p910_p13 = pneg %p909_p12 }
  0x69   : > { %p917_p8 = pnand %p916_p9, %p910_p13 }
  0x6b   : > { %920 = shalt.err (!%p917_p8)
}
  0x6c   : > { %757 = dma.hbm_to_vmem [thread:$0]  (!%p1401_p3), %s1367_s0, 128, %s1204_s23, [#allocation3]  }
  0x6d   : > { %s1264_s1 = scalar_lea.hbm %s1370_s3, %s1121_s26  ;;  %s239_s19 = scalar_lea.vmem [#allocation8], %s1128_s28 }
  0x6e   : > { %s246_s25 = sshll.u32 %s239_s19, 4  ;;  %s1402_s21 = sand.u32 1, %s1029_s17   ;;  %s247_s25 = int_to_ptr.vmem [resolvable:$true] %s246_s25 }
  0x6f   : > { %s236_s22 = scalar_lea.sflag [#allocation9], %s1402_s21  ;;  %s921_s29 = scalar_lea.hbm %s1264_s1, 128 }
  0x70   : > { %p922_p8 = scmp.ne.s32.totalorder %s1264_s1, %s921_s29  ;;  %p1403_p9 = scmp.ne.s32.totalorder %s1392_s11, 0 }
  0x71   : > { %s926_s8 = scalar_lea.hbm %s1370_s3, 512  ;;  %p927_p3 = scmp.lt.u32.totalorder %s1264_s1, %s1370_s3 }
  0x72   : > { %p924_p10 = pnand %p922_p8, %p1403_p9  ;;  %p928_p7 = scmp.lt.u32.totalorder %s926_s8, %s921_s29 }
  0x73   : > { %p930_p6 = scmp.lt.u32.totalorder %s921_s29, %s1264_s1 }
  0x74   : > { %p925_p5 = pneg %p924_p10  ;;  %p929_p11 = por %p928_p7, %p927_p3 }
  0x76   : > { %p931_p1 = por %p930_p6, %p929_p11 }
  0x78   : > { %p932_p2 = pnand %p931_p1, %p925_p5 }
  0x7a   : > { %935 = shalt.err (!%p932_p2)
}
  0x7b   : > { %s936_s28 = scalar_lea.vmem %s247_s25, 128  ;;  %s1046_s30 = smov [#allocation8]  }
  0x7c   : > { %p937_p12 = scmp.ne.s32.totalorder %s247_s25, %s936_s28  ;;  %s941_s12 = sshll.u32 %s1046_s30, 4  ;;  %s942_s12 = int_to_ptr.vmem [resolvable:$false] %s941_s12 }
  0x7d   : > { %s943_s7 = scalar_lea.vmem %s942_s12, 256  ;;  %p944_p4 = scmp.lt.s32.totalorder %s247_s25, %s942_s12 }
  0x7e   : > { %p939_p13 = pnand %p937_p12, %p1403_p9  ;;  %p945_p8 = scmp.lt.s32.totalorder %s943_s7, %s936_s28 }
  0x80   : > { %p940_p0 = pneg %p939_p13  ;;  %p946_p10 = por %p945_p8, %p944_p4 }
  0x82   : > { %p947_p3 = pnand %p946_p10, %p940_p0 }
  0x84   : > { %950 = shalt.err (!%p947_p3)
}
  0x85   : > { %p1404_p7 = scmp.ne.s32.totalorder %s1391_s6, 0  ;;  %p1405_p5 = scmp.ne.s32.totalorder %s1398_s14, 0 }
  0x86   : > { %p1406_p11 = scmp.eq.s32.totalorder (!%p1405_p5), %s1174_s10, 0 }
  0x87   : > { %767 = dma.hbm_to_vmem [thread:$0]  (!%p1404_p7), %s1264_s1, 128, %s247_s25, %s236_s22  }
  0x88   : > { %255 = sbr.rel (%p1405_p5) target bundleno = 841 (0x349), region = 36 }
  0x8f   : > { %1004 = dma.done.wait (%p1406_p11), [#allocation3], 128   ;;  %p1407_p9 = pmov %p1406_p11 }
  0x90   : > { %s261_s11 = sand.u32 1, %s1174_s10   ;;  %s1294_s24 = sand.u32 1, %s1025_s16  }
  0x91   : > { %1006 = vsyncadd (%p1407_p9), [#allocation3], 4294967168  ;;  %s1297_s19 = sshll.u32 %s1294_s24, 3  ;;  %s262_s6 = scalar_lea.sflag [#allocation6], %s261_s11 }
  0x92   : > { %s265_s1 = scalar_lea.vmem [#allocation5], %s1297_s19  ;;  %p1408_p6 = scmp.ne.s32.totalorder %s1393_s13, 0 }
  0x94   : > { %1008 = dma.done.wait (%p1408_p6), %s262_s6, 256  }
  0x95   : > { %1010 = vsyncadd (%p1408_p6), %s262_s6, 4294967040  ;;  %s274_s14 = scalar_lea.vmem [#allocation7], %s1297_s19  ;;  %s280_s25 = scalar_lea.sflag [#allocation9], %s1294_s24 }
  0x96   : > { %s283_s10 = scalar_lea.vmem [#allocation8], %s1297_s19 }
  0x97   : > { %1012 = dma.done.wait (%p1408_p6), %s280_s25, 128  }
  0x98   : > { %1014 = vsyncadd (%p1408_p6), %s280_s25, 4294967168  ;;  %v1047_v0 = vmov 0.0   ;;  %vm1048_vm0 = vmmov 0   ;;  %vm320_vm1 = vcmask 64512   ;;  %v318_v1 = vld [vmem:[#allocation2] sm:$0xff]  ;;  %v319_v2 = vld [vmem:[%s265_s1] sm:$0xff] }
  0x99   : > { %727 = vmatprep.subr.mxu0 %v1047_v0  ;;  %729 = vmatprep.mubr.msk.f32.mxu0 %vm1048_vm0, %v1047_v0  ;;  %v395_v5 = vld [vmem:[%s274_s14] sm:$0xff]  ;;  %v470_v9 = vld [vmem:[%s283_s10] sm:$0xff]  ;;  %s718_s13 = sshll.u32 %s1033_s18, 7  ;;  %s317_s21 = scalar_lea.vmem [#allocation10], %s1297_s19 }
  0x9a   : > { %732 = vmatprep.subr.mxu1 %v1047_v0  ;;  %734 = vmatprep.mubr.msk.f32.mxu1 %vm1048_vm0, %v1047_v0  ;;  %s561_s22 = sshll.u32 %s317_s21, 4  ;;  %s1319_s27 = scalar_lea.hbm %s1371_s4, %s718_s13  ;;  %s1321_s22 = int_to_ptr.vmem [resolvable:$true] %s561_s22 }
  0x9b   : > { %728 = vmatpush3.msra.mxu0 %v318_v1  ;;  %s547_s8 = scalar_lea.sflag [#allocation4], %s1294_s24  ;;  %s951_s26 = scalar_lea.vmem %s1321_s22, 128 }
  0x9c   : > { %730 = vmatmul.mubr.msk.f32.vlgmr.msra.gmra.mrb[0].mxu0 %vm320_vm1, %v319_v2  ;;  %737 = vmatprep.subr.mxu0 %v1047_v0  ;;  %p952_p1 = scmp.ne.s32.totalorder %s1321_s22, %s951_s26  ;;  %p1409_p2 = scmp.ne.s32.totalorder %s1395_s5, 0 }
  0x9d   : > { %739 = vmatprep.mubr.msk.f32.mxu0 %vm1048_vm0, %v1047_v0  ;;  %s1049_s18 = smov [#allocation10]  }
  0x9e   : > { %p953_p12 = pnand %p952_p1, %p1409_p2  ;;  %s955_s9 = sshll.u32 %s1049_s18, 4  ;;  %s956_s9 = int_to_ptr.vmem [resolvable:$false] %s955_s9 }
  0x9f   : > { %s957_s28 = scalar_lea.vmem %s956_s9, 256  ;;  %p958_p0 = scmp.lt.s32.totalorder %s1321_s22, %s956_s9 }
  0xa0   : > { %p954_p13 = pneg %p953_p12  ;;  %p959_p4 = scmp.lt.s32.totalorder %s957_s28, %s951_s26 }
  0xa2   : > { %p960_p8 = por %p959_p4, %p958_p0 }
  0xa4   : > { %p961_p10 = pnand %p960_p8, %p954_p13 }
 0x16f   : > { %v390_v3 = vpop.f32.mrb[0].mxu0 }
 0x170   : > { %827 = vtanh.f32 %v390_v3  ;;  %v731_v4 = vpop.f32.mrb[1].mxu0 }
 0x17a   : > { %v828_v6 = vpop.eup %827 }
 0x17b   : > { %733 = vmatpush3.msra.mxu1 %v828_v6 }
 0x17c   : > { %735 = vmatmul.mubr.msk.f32.vlgmr.msra.gmra.mrb[0].mxu1 %vm320_vm1, %v395_v5 }
 0x24f   : > { %v465_v7 = vpop.f32.mrb[0].mxu1 }
 0x250   : > { %829 = vtanh.f32 %v465_v7  ;;  %v736_v8 = vpop.f32.mrb[1].mxu1 }
 0x25a   : > { %v830_v10 = vpop.eup %829 }
 0x25b   : > { %738 = vmatpush3.msra.mxu0 %v830_v10 }
 0x25c   : > { %740 = vmatmul.mubr.msk.f32.vlgmr.msra.gmra.mrb[2].mxu0 %vm320_vm1, %v470_v9 }
 0x32f   : > { %v540_v11 = vpop.f32.mrb[2].mxu0 }
 0x330   : > { %831 = vtanh.f32 %v540_v11  ;;  %v741_v12 = vpop.f32.mrb[3].mxu0 }
 0x33a   : > { %v832_v13 = vpop.eup %831 }
 0x33b   : > { %545 = vst [vmem:[%s317_s21] sm:$0xff] %v832_v13 }
 0x33c   : > { %964 = shalt.err (!%p961_p10)
}
 0x33d   : > { %s965_s30 = scalar_lea.hbm %s1319_s27, 128  ;;  %s969_s11 = scalar_lea.hbm %s1371_s4, 512 }
 0x33e   : > { %p966_p3 = scmp.ne.s32.totalorder %s1319_s27, %s965_s30  ;;  %p970_p11 = scmp.lt.u32.totalorder %s1319_s27, %s1371_s4 }
 0x33f   : > { %p971_p9 = scmp.lt.u32.totalorder %s969_s11, %s965_s30  ;;  %p973_p1 = scmp.lt.u32.totalorder %s965_s30, %s1319_s27 }
 0x340   : > { %p967_p7 = pnand %p966_p3, %p1409_p2 }
 0x341   : > { %p972_p6 = por %p971_p9, %p970_p11 }
 0x342   : > { %p968_p5 = pneg %p967_p7 }
 0x343   : > { %p974_p12 = por %p973_p1, %p972_p6 }
 0x345   : > { %p975_p13 = pnand %p974_p12, %p968_p5 }
 0x347   : > { %978 = shalt.err (!%p975_p13)
}
 0x348   : > { %752 = dma.vmem_to_hbm [thread:$0]  (%p1409_p2), %s1321_s22, 128, %s1319_s27, %s547_s8  }
 0x349 PF: > { %s1410_s6 = sld [smem:[#allocation18_spill]]  ;;  %p775_p0 = scmp.ge.s32.totalorder %s1041_s20, 2 }
 0x34a   : > { %s573_s1 = sand.u32 1, %s1021_s15  }
 0x34b   : > { %s574_s14 = scalar_lea.sflag [#allocation4], %s573_s1 }
 0x34f   : > { %p1411_p4 = scmp.ne.s32.totalorder %s1410_s6, 0 }
 0x351   : > { %p769_p8 = pnand %p775_p0, %p1411_p4 }
 0x353   : > { %1016 = dma.done.wait (!%p769_p8), %s574_s14, 128  }
 0x354   : > { %1018 = vsyncadd (!%p769_p8), %s574_s14, 4294967168  ;;  %s24_s20 = sadd.s32 1, %s1041_s20   ;;  %s1412_s5 = sld [smem:[#allocation17_spill]] }
 0x355   : > { %p21_p10 = scmp.ge.s32.totalorder %s24_s20, 6   ;;  %s1413_s18 = sld [smem:[#allocation15_spill]] }
 0x356   : > { %s1414_s19 = sld [smem:[#allocation16_spill]]  ;;  %s1415_s15 = smov %s1025_s16 }
 0x357   : > { %s1416_s16 = smov %s1029_s17  ;;  %23 = sbr.rel (!%p21_p10) target bundleno = 11 (0xb), region = 111 }
 0x35a   : > { %s1417_s17 = smov %s1412_s5 }
 0x35e   :  { %579 = vsyncpa [#allocation3], 1 }
 0x35f   :  { %581 = vsyncpa [#allocation3 + $0x1], 1 }
 0x360   :  { %582 = vsyncpa [#allocation6], 1 }
 0x361   :  { %584 = vsyncpa [#allocation6 + $0x1], 1 }
 0x362   :  { %585 = vsyncpa [#allocation9], 1 }
 0x363   :  { %587 = vsyncpa [#allocation9 + $0x1], 1 }
 0x364   :  { %588 = vsyncpa [#allocation4], 1 }
 0x365   :  { %590 = vsyncpa [#allocation4 + $0x1], 1 }

</bundles_post_ra>
